<compile_context>
chip_gen: v7x
topology: tpu7x:2x2x1
jax: 0.10.0
libtpu: 0.0.40
codegen_flags: <defaults>
</compile_context>

<pallas_src>
import functools

import jax
import jax.numpy as jnp
from jax.experimental import pallas as pl
from jax.experimental.pallas import tpu as pltpu

_LANE = 128
# Per-batch-row f32 working-set cap for the fully-resident fused kernel; keeps
# the per-op vreg unroll around the documented-good ~1K-vreg block size.
_FUSED_ROW_F32_CAP = 4 << 20
_VMEM_MARGIN = 2 << 20            # weights + compiler-internal scratch headroom
_MAX_BATCH_BLOCK = 8              # bounds trace-time unroll of the batch loop


def _round_up(x, m):
    return (x + m - 1) // m * m


def _vmem_budget_bytes():
    """~75% of physical VMEM: v5e/v6e -> 96 MiB, v7x -> 48 MiB.

    Also passed as vmem_limit_bytes so the byte-based tiles compile cleanly on
    v5e (16 MiB scoped default) without silently shrinking pipelining.
    """
    cap = 64 << 20                                     # conservative fallback
    try:
        info = pltpu.get_tpu_info()
        cap = int(getattr(info, "vmem_capacity_bytes", cap))
    except Exception:
        pass
    return (cap * 3) // 4


# ---------------------------------------------------------------------------
# Fused single-pass kernel: per-batch (C, HWp) slab fully resident in VMEM.
#   out = x * (sigmoid(w_sq @ x) + sigmoid(w2 @ relu(w1 @ mean(x) + b1) + b2))
# ---------------------------------------------------------------------------
def _scse_fused_kernel(x_ref, wsq_ref, w1t_ref, b1_ref, w2t_ref, b2_ref, o_ref,
                       *, n_batch, inv_hw):
    for b in range(n_batch):                   # n_batch <= _MAX_BATCH_BLOCK
        xb = x_ref[b].astype(jnp.float32)                        # (C, HWp)
        # Global average pool: padded lanes are zero, divide by the TRUE HW.
        m = jnp.sum(xb, axis=1, keepdims=True) * inv_hw          # (C, 1)
        h = jnp.maximum(
            jnp.dot(w1t_ref[...], m, preferred_element_type=jnp.float32)
            + b1_ref[...], 0.0)                                  # (Cr, 1)
        g = jax.nn.sigmoid(
            jnp.dot(w2t_ref[...], h, preferred_element_type=jnp.float32)
            + b2_ref[...])                                       # (C, 1)
        zs = jax.nn.sigmoid(
            jnp.dot(wsq_ref[...], xb, preferred_element_type=jnp.float32))  # (1, HWp)
        o_ref[b] = (xb * (zs + g)).astype(o_ref.dtype)


# ---------------------------------------------------------------------------
# Streaming fallback, pass 1: per-batch channel gate g, shape (B, C, 1), f32.
# NOTE: the scratch accumulator relies on the HW-tile axis being the innermost,
# sequentially iterated ("arbitrary") grid axis and on megacore sharding only
# along batch.  Do not reorder the grid or mark axis 1 "parallel".
# (Known limitation: with B == 1 on v7x the reduction pass uses one TensorCore.)
# ---------------------------------------------------------------------------
def _catt_gate_kernel(x_ref, w1t_ref, b1_ref, w2t_ref, b2_ref, g_ref, acc_ref,
                      *, hw_total):
    t = pl.program_id(1)

    @pl.when(t == 0)
    def _():
        acc_ref[...] = jnp.zeros_like(acc_ref)

    # Channel-wise spatial sum of this (C, TILE) tile, accumulated in f32.
    acc_ref[...] += jnp.sum(x_ref[0].astype(jnp.float32), axis=1, keepdims=True)

    @pl.when(t == pl.num_programs(1) - 1)
    def _():
        m = acc_ref[...] * (1.0 / hw_total)                      # true-HW mean
        h = jnp.maximum(
            jnp.dot(w1t_ref[...], m, preferred_element_type=jnp.float32)
            + b1_ref[...], 0.0)                                  # (Cr, 1)
        g = jax.nn.sigmoid(
            jnp.dot(w2t_ref[...], h, preferred_element_type=jnp.float32)
            + b2_ref[...])                                       # (C, 1)
        g_ref[0] = g


# ---------------------------------------------------------------------------
# Streaming fallback, pass 2: out = x * (sigmoid(w_sq @ x) + g)
# ---------------------------------------------------------------------------
def _scse_apply_kernel(x_ref, wsq_ref, g_ref, o_ref):
    x = x_ref[0].astype(jnp.float32)                             # (C, TILE)
    zs = jax.nn.sigmoid(
        jnp.dot(wsq_ref[...], x, preferred_element_type=jnp.float32))  # (1, TILE)
    o_ref[0] = (x * (zs + g_ref[0])).astype(o_ref.dtype)


def _pick_hw_tile(hwp, c, itemsize, target_block_bytes):
    """Largest multiple of 128 dividing hwp whose (C, tile) block stays at or
    under target_block_bytes (byte-based, not lane-capped)."""
    cap = max(_LANE, (target_block_bytes // max(c * itemsize, 1)) // _LANE * _LANE)
    best = _LANE
    t = _LANE
    limit = min(hwp, cap)
    while t <= limit:
        if hwp % t == 0:
            best = t
        t += _LANE
    return best


def _pick_batch_block(B, per_row_bytes, extra_bytes, budget):
    """Largest divisor of B (<= _MAX_BATCH_BLOCK) fitting the VMEM budget while
    keeping >= 2 grid steps when B >= 2 (v7x dual-TensorCore sharding)."""
    best = 1
    for bb in range(1, min(B, _MAX_BATCH_BLOCK) + 1):
        if B % bb:
            continue
        if B >= 2 and B // bb < 2:
            break
        if bb * per_row_bytes + extra_bytes > budget:
            break
        best = bb
    return best


def scse_pallas(x_nchw, w_sq, w1t, b1, w2t, b2, *,
                force_streaming=False, target_block_bytes=4 << 20):
    """SCse forward on NCHW input.

    x_nchw : (B, C, H, W)
    w_sq   : (1, C)   squeeze conv weight (out=1, in=C), no bias
    w1t    : (Cr, C)  conv1 weight (out=Cr, in=C)
    b1     : (Cr, 1)  conv1 bias
    w2t    : (C, Cr)  conv2 weight (out=C, in=Cr)
    b2     : (C, 1)   conv2 bias
    """
    B, C, H, W = x_nchw.shape
    HW = H * W
    Cr = w1t.shape[0]
    itemsize = jnp.dtype(x_nchw.dtype).itemsize

    # Pad the spatial axis to a multiple of 128 lanes (lane-dense stores).
    HWp = _round_up(HW, _LANE)
    x = x_nchw.reshape(B, C, HW)            # contiguous reshape, no transpose
    if HWp != HW:
        x = jnp.pad(x, ((0, 0), (0, 0), (0, HWp - HW)))

    budget = _vmem_budget_bytes()

    # Fused path needs 2x in + 2x out double-buffered blocks (native dtype)
    # plus ~3 f32-slab temporaries for the in-kernel chain, per batch row.
    row_io_bytes = C * HWp * itemsize
    row_f32_bytes = C * HWp * 4
    per_row_need = 4 * row_io_bytes + 3 * row_f32_bytes

    use_fused = (not force_streaming
                 and row_f32_bytes <= _FUSED_ROW_F32_CAP
                 and per_row_need + _VMEM_MARGIN <= budget)

    if use_fused:
        Bb = _pick_batch_block(B, per_row_need, _VMEM_MARGIN, budget)
        nb = B // Bb
        out = pl.pallas_call(
            functools.partial(_scse_fused_kernel, n_batch=Bb, inv_hw=1.0 / HW),
            out_shape=jax.ShapeDtypeStruct((B, C, HWp), x.dtype),
            grid_spec=pltpu.PrefetchScalarGridSpec(
                num_scalar_prefetch=0,
                grid=(nb,),
                in_specs=[
                    pl.BlockSpec((Bb, C, HWp), lambda i: (i, 0, 0)),   # x
                    pl.BlockSpec((1, C), lambda i: (0, 0)),            # w_sq
                    pl.BlockSpec((Cr, C), lambda i: (0, 0)),           # w1t
                    pl.BlockSpec((Cr, 1), lambda i: (0, 0)),           # b1
                    pl.BlockSpec((C, Cr), lambda i: (0, 0)),           # w2t
                    pl.BlockSpec((C, 1), lambda i: (0, 0)),            # b2
                ],
                out_specs=pl.BlockSpec((Bb, C, HWp), lambda i: (i, 0, 0)),
            ),
            compiler_params=pltpu.CompilerParams(
                dimension_semantics=("parallel",),
                vmem_limit_bytes=budget),
        )(x, w_sq, w1t, b1, w2t, b2)
    else:
        # ---- streaming two-pass fallback (x read twice from HBM) -----------
        tile = _pick_hw_tile(HWp, C, itemsize, target_block_bytes)
        n_tiles = HWp // tile

        # pass 1: channel gate g, shape (B, C, 1), f32
        g = pl.pallas_call(
            functools.partial(_catt_gate_kernel, hw_total=float(HW)),
            out_shape=jax.ShapeDtypeStruct((B, C, 1), jnp.float32),
            grid_spec=pltpu.PrefetchScalarGridSpec(
                num_scalar_prefetch=0,
                grid=(B, n_tiles),
                in_specs=[
                    pl.BlockSpec((1, C, tile), lambda b, t: (b, 0, t)),  # x
                    pl.BlockSpec((Cr, C), lambda b, t: (0, 0)),          # w1t
                    pl.BlockSpec((Cr, 1), lambda b, t: (0, 0)),          # b1
                    pl.BlockSpec((C, Cr), lambda b, t: (0, 0)),          # w2t
                    pl.BlockSpec((C, 1), lambda b, t: (0, 0)),           # b2
                ],
                out_specs=pl.BlockSpec((1, C, 1), lambda b, t: (b, 0, 0)),
                scratch_shapes=[pltpu.VMEM((C, 1), jnp.float32)],
            ),
            compiler_params=pltpu.CompilerParams(
                dimension_semantics=("parallel", "arbitrary"),
                vmem_limit_bytes=budget),
        )(x, w1t, b1, w2t, b2)

        # pass 2: out = x * (sigmoid(w_sq @ x) + g)
        out = pl.pallas_call(
            _scse_apply_kernel,
            out_shape=jax.ShapeDtypeStruct((B, C, HWp), x.dtype),
            grid_spec=pltpu.PrefetchScalarGridSpec(
                num_scalar_prefetch=0,
                grid=(B, n_tiles),
                in_specs=[
                    pl.BlockSpec((1, C, tile), lambda b, t: (b, 0, t)),  # x
                    pl.BlockSpec((1, C), lambda b, t: (0, 0)),           # w_sq
                    pl.BlockSpec((1, C, 1), lambda b, t: (b, 0, 0)),     # g
                ],
                out_specs=pl.BlockSpec((1, C, tile), lambda b, t: (b, 0, t)),
            ),
            compiler_params=pltpu.CompilerParams(
                dimension_semantics=("parallel", "parallel"),
                vmem_limit_bytes=budget),
        )(x, w_sq, g)

    if HWp != HW:
        out = out[:, :, :HW]
    return out.reshape(B, C, H, W)


def scse_reference(x_nchw, w_sq, w1t, b1, w2t, b2):
    """Pure-JAX reference matching the PyTorch forward (NCHW)."""
    B, C, H, W = x_nchw.shape
    x = x_nchw.reshape(B, C, H * W)                                   # (B,C,HW)
    zs = jax.nn.sigmoid(jnp.einsum("oc,bcs->bos", w_sq, x))           # (B,1,HW)
    m = jnp.mean(x, axis=2, keepdims=True)                            # (B,C,1)
    h = jnp.maximum(jnp.einsum("rc,bcl->brl", w1t, m) + b1, 0.0)      # (B,Cr,1)
    g = jax.nn.sigmoid(jnp.einsum("cr,brl->bcl", w2t, h) + b2)        # (B,C,1)
    out = x * zs + x * g
    return out.reshape(B, C, H, W)


if __name__ == "__main__":
    def run_case(B, C, H, W, reduction, seed, **kwargs):
        Cr = max(C // reduction, 1)
        key = jax.random.PRNGKey(seed)
        k_x, k_sq, k_w1, k_b1, k_w2, k_b2 = jax.random.split(key, 6)

        x = jax.random.normal(k_x, (B, C, H, W), dtype=jnp.float32)
        # PyTorch Conv2d 1x1 weights (out,in,1,1) kept in (out,in) layout.
        w_sq = jax.random.normal(k_sq, (1, C), dtype=jnp.float32) * 0.5
        w1t = jax.random.normal(k_w1, (Cr, C), dtype=jnp.float32) * 0.5
        b1 = jax.random.normal(k_b1, (Cr, 1), dtype=jnp.float32) * 0.1
        w2t = jax.random.normal(k_w2, (C, Cr), dtype=jnp.float32) * 0.5
        b2 = jax.random.normal(k_b2, (C, 1), dtype=jnp.float32) * 0.1

        out = scse_pallas(x, w_sq, w1t, b1, w2t, b2, **kwargs)
        jax.block_until_ready(out)

        ref = scse_reference(x, w_sq, w1t, b1, w2t, b2)
        assert out.shape == (B, C, H, W)
        err = float(jnp.max(jnp.abs(out - ref)))
        assert err < 1e-4, "max abs err = %g" % err

    # Module-spec shape: fused resident path, Bb=1 (2 parallel grid steps).
    run_case(2, 4, 16, 16, 4, 0)
    # Fused path with a multi-batch block (Bb=2, 2 grid steps).
    run_case(4, 4, 16, 16, 4, 1)
    # HW not a multiple of 128 -> zero-pad to 128 lanes, true-HW mean.
    run_case(2, 8, 7, 7, 4, 2)
    # Force the streaming two-pass fallback with tiny tiles to exercise the
    # multi-tile accumulator path (HW=4096 -> 32 tiles of 128 lanes).
    run_case(1, 8, 64, 64, 4, 3, force_streaming=True,
             target_block_bytes=8 * 128 * 4)
    # Streaming fallback combined with spatial padding (HW=324 -> 384, 3 tiles).
    run_case(2, 4, 18, 18, 4, 4, force_streaming=True,
             target_block_bytes=4 * 128 * 4)

    print("KERNEL_OK")
</pallas_src>

<mosaic_0001>
module attributes {stable_mosaic.version = 11 : i64} {
  func.func @_scse_fused_kernel(%arg0: i32, %arg1: memref<1x4x256xf32, #tpu.memory_space<vmem>>, %arg2: memref<1x4xf32, #tpu.memory_space<vmem>>, %arg3: memref<1x4xf32, #tpu.memory_space<vmem>>, %arg4: memref<1x1xf32, #tpu.memory_space<vmem>>, %arg5: memref<4x1xf32, #tpu.memory_space<vmem>>, %arg6: memref<4x1xf32, #tpu.memory_space<vmem>>, %arg7: memref<1x4x256xf32, #tpu.memory_space<vmem>>) attributes {dimension_semantics = [#tpu.dimension_semantics<parallel>], iteration_bounds = array<i64: 2>, scalar_prefetch = 0 : i64, scratch_operands = 0 : i64, tpu.core_type = #tpu.core_type<tc>, window_params = [{transform_indices = @transform_0, window_bounds = array<i64: 1, 4, 256>}, {pipeline_mode = #tpu.pipeline_mode<synchronous>, transform_indices = @transform_1, window_bounds = array<i64: 1, 4>}, {pipeline_mode = #tpu.pipeline_mode<synchronous>, transform_indices = @transform_2, window_bounds = array<i64: 1, 4>}, {pipeline_mode = #tpu.pipeline_mode<synchronous>, transform_indices = @transform_3, window_bounds = array<i64: 1, 1>}, {pipeline_mode = #tpu.pipeline_mode<synchronous>, transform_indices = @transform_4, window_bounds = array<i64: 4, 1>}, {pipeline_mode = #tpu.pipeline_mode<synchronous>, transform_indices = @transform_5, window_bounds = array<i64: 4, 1>}, {transform_indices = @transform_6, window_bounds = array<i64: 1, 4, 256>}]} {
    %c0 = arith.constant 0 : index
    %c0_0 = arith.constant 0 : index
    %c0_1 = arith.constant 0 : index
    %0 = vector.load %arg1[%c0, %c0_0, %c0_1] : memref<1x4x256xf32, #tpu.memory_space<vmem>>, vector<1x4x256xf32>
    %1 = vector.shape_cast %0 : vector<1x4x256xf32> to vector<4x256xf32>
    %cst = arith.constant dense<0.000000e+00> : vector<4xf32>
    %2 = vector.multi_reduction <add>, %1, %cst [1] : vector<4x256xf32> to vector<4xf32>
    %3 = vector.shape_cast %2 : vector<4xf32> to vector<4x1xf32>
    %cst_2 = arith.constant 3.906250e-03 : f32
    %4 = vector.broadcast %cst_2 : f32 to vector<4x1xf32>
    %5 = arith.mulf %3, %4 : vector<4x1xf32>
    %c0_3 = arith.constant 0 : index
    %c0_4 = arith.constant 0 : index
    %6 = vector.load %arg3[%c0_3, %c0_4] : memref<1x4xf32, #tpu.memory_space<vmem>>, vector<1x4xf32>
    %cst_5 = arith.constant dense<0.000000e+00> : vector<1x1xf32>
    %7 = tpu.matmul %6, %5, %cst_5 {dimension_numbers = #tpu.dot_dimension_numbers<[1], [0], [0], [1], [0, 0, 1, 1], [], []>} : vector<1x4xf32>, vector<4x1xf32>, vector<1x1xf32> -> vector<1x1xf32>
    %c0_6 = arith.constant 0 : index
    %c0_7 = arith.constant 0 : index
    %8 = vector.load %arg4[%c0_6, %c0_7] : memref<1x1xf32, #tpu.memory_space<vmem>>, vector<1x1xf32>
    %9 = arith.addf %7, %8 : vector<1x1xf32>
    %cst_8 = arith.constant 0.000000e+00 : f32
    %10 = vector.broadcast %cst_8 : f32 to vector<1x1xf32>
    %11 = arith.maximumf %9, %10 : vector<1x1xf32>
    %c0_9 = arith.constant 0 : index
    %c0_10 = arith.constant 0 : index
    %12 = vector.load %arg5[%c0_9, %c0_10] : memref<4x1xf32, #tpu.memory_space<vmem>>, vector<4x1xf32>
    %cst_11 = arith.constant dense<0.000000e+00> : vector<4x1xf32>
    %13 = tpu.matmul %12, %11, %cst_11 {dimension_numbers = #tpu.dot_dimension_numbers<[1], [0], [0], [1], [0, 0, 1, 1], [], []>} : vector<4x1xf32>, vector<1x1xf32>, vector<4x1xf32> -> vector<4x1xf32>
    %c0_12 = arith.constant 0 : index
    %c0_13 = arith.constant 0 : index
    %14 = vector.load %arg6[%c0_12, %c0_13] : memref<4x1xf32, #tpu.memory_space<vmem>>, vector<4x1xf32>
    %15 = arith.addf %13, %14 : vector<4x1xf32>
    %16 = arith.negf %15 : vector<4x1xf32>
    %17 = math.exp %16 : vector<4x1xf32>
    %cst_14 = arith.constant 1.000000e+00 : f32
    %18 = vector.broadcast %cst_14 : f32 to vector<4x1xf32>
    %19 = arith.addf %18, %17 : vector<4x1xf32>
    %20 = arith.divf %18, %19 : vector<4x1xf32>
    %c0_15 = arith.constant 0 : index
    %c0_16 = arith.constant 0 : index
    %21 = vector.load %arg2[%c0_15, %c0_16] : memref<1x4xf32, #tpu.memory_space<vmem>>, vector<1x4xf32>
    %cst_17 = arith.constant dense<0.000000e+00> : vector<1x256xf32>
    %22 = tpu.matmul %21, %1, %cst_17 {dimension_numbers = #tpu.dot_dimension_numbers<[1], [0], [0], [1], [0, 0, 1, 1], [], []>} : vector<1x4xf32>, vector<4x256xf32>, vector<1x256xf32> -> vector<1x256xf32>
    %23 = arith.negf %22 : vector<1x256xf32>
    %24 = math.exp %23 : vector<1x256xf32>
    %cst_18 = arith.constant 1.000000e+00 : f32
    %25 = vector.broadcast %cst_18 : f32 to vector<1x256xf32>
    %26 = arith.addf %25, %24 : vector<1x256xf32>
    %27 = arith.divf %25, %26 : vector<1x256xf32>
    %28 = vector.broadcast %27 : vector<1x256xf32> to vector<4x256xf32>
    %29 = vector.broadcast %20 : vector<4x1xf32> to vector<4x256xf32>
    %30 = arith.addf %28, %29 : vector<4x256xf32>
    %31 = arith.mulf %1, %30 : vector<4x256xf32>
    %c0_19 = arith.constant 0 : index
    %c0_20 = arith.constant 0 : index
    %c0_21 = arith.constant 0 : index
    %32 = vector.load %arg7[%c0_19, %c0_20, %c0_21] : memref<1x4x256xf32, #tpu.memory_space<vmem>>, vector<1x4x256xf32>
    %33 = vector.shape_cast %32 : vector<1x4x256xf32> to vector<4x256xf32>
    %34 = vector.shape_cast %31 : vector<4x256xf32> to vector<1x4x256xf32>
    tpu.vector_store %arg7[%c0_19, %c0_20, %c0_21], %34 {strides = array<i32>} : memref<1x4x256xf32, #tpu.memory_space<vmem>>, vector<1x4x256xf32>,
    return
  }
  func.func @transform_0(%arg0: i32) -> (i32, i32, i32) {
    %c0_i32 = arith.constant 0 : i32
    %c0_i32_0 = arith.constant 0 : i32
    %c0_i32_1 = arith.constant 0 : i32
    return %arg0, %c0_i32, %c0_i32_0 : i32, i32, i32
  }
  func.func @transform_1(%arg0: i32) -> (i32, i32) {
    %c0_i32 = arith.constant 0 : i32
    %c0_i32_0 = arith.constant 0 : i32
    %c0_i32_1 = arith.constant 0 : i32
    return %c0_i32, %c0_i32_0 : i32, i32
  }
  func.func @transform_2(%arg0: i32) -> (i32, i32) {
    %c0_i32 = arith.constant 0 : i32
    %c0_i32_0 = arith.constant 0 : i32
    %c0_i32_1 = arith.constant 0 : i32
    return %c0_i32, %c0_i32_0 : i32, i32
  }
  func.func @transform_3(%arg0: i32) -> (i32, i32) {
    %c0_i32 = arith.constant 0 : i32
    %c0_i32_0 = arith.constant 0 : i32
    %c0_i32_1 = arith.constant 0 : i32
    return %c0_i32, %c0_i32_0 : i32, i32
  }
  func.func @transform_4(%arg0: i32) -> (i32, i32) {
    %c0_i32 = arith.constant 0 : i32
    %c0_i32_0 = arith.constant 0 : i32
    %c0_i32_1 = arith.constant 0 : i32
    return %c0_i32, %c0_i32_0 : i32, i32
  }
  func.func @transform_5(%arg0: i32) -> (i32, i32) {
    %c0_i32 = arith.constant 0 : i32
    %c0_i32_0 = arith.constant 0 : i32
    %c0_i32_1 = arith.constant 0 : i32
    return %c0_i32, %c0_i32_0 : i32, i32
  }
  func.func @transform_6(%arg0: i32) -> (i32, i32, i32) {
    %c0_i32 = arith.constant 0 : i32
    %c0_i32_0 = arith.constant 0 : i32
    %c0_i32_1 = arith.constant 0 : i32
    return %arg0, %c0_i32, %c0_i32_0 : i32, i32, i32
  }
}

</mosaic_0001>

<bundles_post_ra>
// kernel: tpu_custom_call.1
= control target key start
LH: loop header
LB: loop body
LE: loop exit
PB: predicated region body
PF: predicated region fallthrough
CT: control target
= control target key end

     0   :  { %s1077_s0 = inlined_call_operand.hbm [shape: f32[2,4,256], index: 0, kind: input, shape index: {}]   ;;  %s1078_s1 = inlined_call_operand.vmem [shape: f32[1,4], index: 1, kind: input, shape index: {}]   ;;  %s1079_s2 = inlined_call_operand.vmem [shape: f32[1,4], index: 2, kind: input, shape index: {}]   ;;  %s1080_s3 = inlined_call_operand.<no memory space> [shape: f32[1,1], index: 3, kind: input, shape index: {}]   ;;  %s1081_s4 = inlined_call_operand.vmem [shape: f32[4,1], index: 4, kind: input, shape index: {}]   ;;  %s1082_s5 = inlined_call_operand.vmem [shape: f32[4,1], index: 5, kind: input, shape index: {}]   ;;  %s1083_s6 = inlined_call_operand.hbm [shape: f32[2,4,256], index: 6, kind: output, shape index: {}]  }
   0x1   :  { %v11_v0 = vstv %s1080_s3 }
   0x2   :  { %12 = vst [vmem:[#allocation2] sm:$0x1] %v11_v0 }
   0x3   :  { %13 = vsyncpa [#allocation4], 0 }
   0x4   :  { %15 = vsyncpa [#allocation4 + $0x1], 0 }
   0x5   :  { %16 = vsyncpa [#allocation5], 0 }
   0x6   :  { %18 = vsyncpa [#allocation5 + $0x1], 0  ;;  %s888_s23 = smov 0   ;;  %s890_s24 = smov 0  }
   0x7   :  { %s892_s25 = smov 0   ;;  %s894_s26 = smov 0  }
   0x8 LB: > { %s909_s3 = sadd.s32 4294967295, %s843_s26   ;;  %s644_s27 = sadd.s32 4294967294, %s843_s26   ;;  %s843_s26 = sphi %s894_s26, %s1098_s26   ;;  %s839_s25 = sphi %s892_s25, %s1097_s25   ;;  %s835_s24 = sphi %s890_s24, %s1096_s24   ;;  %s831_s23 = sphi %s888_s23, %s1095_s23  }
   0x9   : > { %s913_s28 = sadd.s32 1, %s843_s26   ;;  %s31_s29 = sadd.s32 1, %s839_s25 }
   0xa   : > { %s28_s30 = ssub.s32 %s843_s26, %s913_s28  ;;  %p38_p0 = scmp.ne.s32.totalorder %s839_s25, %s835_s24 }
   0xb   : > { %p29_p1 = scmp.eq.s32.totalorder %s28_s30, 0  ;;  %p39_p2 = scmp.eq.s32.totalorder %s843_s26, 0 }
   0xc   : > { %p44_p3 = scmp.ne.s32.totalorder %s835_s24, %s831_s23  ;;  %p45_p4 = scmp.eq.s32.totalorder %s909_s3, 0 }
   0xd   : > { %s925_s7 = scalar_select %p29_p1, %s839_s25, %s31_s29  }
   0xe   : > { %p927_p5 = por %p39_p2, %p38_p0  ;;  %p931_p6 = por %p45_p4, %p44_p3 }
   0xf   : > { %p173_p7 = scmp.eq.s32.totalorder %s909_s3, 1  ;;  %p179_p8 = scmp.eq.s32.totalorder %s644_s27, 1 }
  0x10   : > { %p696_p10 = scmp.lt.s32.totalorder %s843_s26, 2  ;;  %s214_s12 = sand.u32 1, %s839_s25  }
  0x11   : > { %p938_p11 = por %p173_p7, %p38_p0  ;;  %p942_p12 = por %p179_p8, %p44_p3 }
  0x12   : > { %s668_s13 = sshll.u32 %s843_s26, 7  ;;  %s647_s14 = sshll.u32 %s214_s12, 3 }
  0x13   : > { %s1087_s10 = scalar_select %p938_p11, 1, 0 }
  0x14   : > { %s1088_s11 = scalar_select %p942_p12, 1, 0 }
  0x15   : > { %s951_s17 = scalar_lea.hbm %s1077_s0, %s668_s13  ;;  %s218_s18 = scalar_lea.vmem [#allocation3], %s647_s14 }
  0x16   : > { %s226_s19 = sshll.u32 %s218_s18, 4  ;;  %p955_p13 = pnand %p696_p10, %p927_p5  ;;  %s959_s19 = int_to_ptr.vmem [resolvable:$true] %s226_s19 }
  0x17   : > { %s215_s21 = scalar_lea.sflag [#allocation4], %s214_s12  ;;  %s747_s22 = scalar_lea.hbm %s951_s17, 128 }
  0x18   : > { %p748_p2 = scmp.ne.s32.totalorder %s951_s17, %s747_s22  ;;  %p749_p3 = pneg %p955_p13 }
  0x19   : > { %s752_s30 = scalar_lea.hbm %s1077_s0, 256  ;;  %p753_p5 = scmp.lt.u32.totalorder %s951_s17, %s1077_s0 }
  0x1a   : > { %p750_p4 = pnand %p749_p3, %p748_p2  ;;  %p754_p8 = scmp.lt.u32.totalorder %s752_s30, %s747_s22 }
  0x1b   : > { %p756_p9 = scmp.lt.u32.totalorder %s747_s22, %s951_s17 }
  0x1c   : > { %p751_p7 = pneg %p750_p4  ;;  %p755_p10 = por %p754_p8, %p753_p5 }
  0x1e   : > { %p757_p0 = por %p756_p9, %p755_p10 }
  0x20   : > { %p758_p1 = pnand %p757_p0, %p751_p7 }
  0x22   : > { %761 = shalt.err (!%p758_p1)
}
  0x23   : > { %s762_s12 = scalar_lea.vmem %s959_s19, 128  ;;  %s845_s14 = smov [#allocation3]  }
  0x24   : > { %p763_p2 = scmp.ne.s32.totalorder %s959_s19, %s762_s12  ;;  %s767_s15 = sshll.u32 %s845_s14, 4  ;;  %s768_s15 = int_to_ptr.vmem [resolvable:$false] %s767_s15 }
  0x25   : > { %s769_s16 = scalar_lea.vmem %s768_s15, 256  ;;  %p770_p11 = scmp.lt.s32.totalorder %s959_s19, %s768_s15 }
  0x26   : > { %p765_p4 = pnand %p763_p2, %p749_p3  ;;  %p771_p5 = scmp.lt.s32.totalorder %s769_s16, %s762_s12 }
  0x28   : > { %p766_p12 = pneg %p765_p4  ;;  %p772_p8 = por %p771_p5, %p770_p11 }
  0x2a   : > { %p773_p9 = pnand %p772_p8, %p766_p12 }
  0x2c   : > { %776 = shalt.err (!%p773_p9)
}
  0x2d   : > { %691 = dma.hbm_to_vmem [thread:$0]  (!%p955_p13), %s951_s17, 128, %s959_s19, %s215_s21  }
  0x2e   : > { %p1090_p0 = scmp.lt.s32.totalorder %s843_s26, 3  ;;  %p1091_p1 = scmp.ge.s32.totalorder %s843_s26, 1 }
  0x30   : > { %p232_p3 = pnand %p1091_p1, %p1090_p0 }
  0x31   : > { %s993_s18 = sand.u32 (!%p232_p3), 1, %s835_s24  }
  0x32   : > { %235 = sbr.rel (%p232_p3) target bundleno = 814 (0x32e), region = 44  ;;  %s651_s22 = sshll.u32 (!%p232_p3), %s993_s18, 3 }
  0x33   : > { %s238_s27 = scalar_lea.sflag (!%p232_p3), [#allocation4], %s993_s18  ;;  %s241_s20 = scalar_lea.vmem (!%p232_p3), [#allocation3], %s651_s22 }
  0x39   : > { %822 = dma.done.wait (%p931_p6), %s238_s27, 128  }
  0x3a   : > { %824 = vsyncadd (%p931_p6), %s238_s27, 4294967168  ;;  %vm274_vm0 = vcmask 1043456   ;;  %v1003_v1 = vld [vmem:[%s241_s20] sm:$0xff]  ;;  %v846_v6 = vmov 0.0   ;;  %vm847_vm1 = vmmov 0   ;;  %vm283_vm2 = vcmask 31744  }
  0x3b   : > { %v272_v2 = vcombine.high %v1003_v1, %v1003_v1  ;;  %v275_v3 = vsel %vm274_vm0, %v1003_v1, 0.0  ;;  %674 = vmatprep.subr.mxu0 %v846_v6  ;;  %679 = vmatprep.subr.mxu1 %v846_v6  ;;  %v281_v9 = vld [vmem:[%s1079_s2] sm:$0x1]  ;;  %vm367_vm3 = vcmask 1040384   ;;  %vm363_vm4 = vcmask 7168   ;;  %s669_s12 = sshll.u32 %s909_s3, 7 }
  0x3c   : > { %676 = vmatprep.mubr.msk.f32.mxu0 %vm847_vm1, %v846_v6  ;;  %681 = vmatprep.mubr.msk.f32.mxu1 %vm847_vm1, %v846_v6  ;;  %v447_v10 = vld [vmem:[%s1078_s1] sm:$0x1]  ;;  %v848_v17 = vmov 0   ;;  %v538_v34 = vlaneseq  ;;  %s269_s14 = scalar_lea.vmem [#allocation6], %s651_s22  ;;  %s1033_s20 = scalar_lea.hbm %s1083_s6, %s669_s12 }
  0x3d   : > { %v276_v4 = vsel %vm274_vm0, %v272_v2, 0.0  ;;  %v282_v11 = vld [vmem:[#allocation2] sm:$0x1]  ;;  %733 = vset.pattern.permute.xlu0 %v848_v17  ;;  %s574_s15 = sshll.u32 %s269_s14, 4  ;;  %s560_s9 = scalar_lea.sflag [#allocation5], %s993_s18  ;;  %s1035_s15 = int_to_ptr.vmem [resolvable:$true] %s574_s15 }
  0x3e   : > { %v277_v5 = vadd.f32 %v276_v4, %v275_v3  ;;  %v361_v16 = vld [vmem:[%s1081_s4] sm:$0xf]  ;;  %v539_v35 = vshrl.u32 %v538_v34, 7  ;;  %s777_s17 = scalar_lea.vmem %s1035_s15, 128  ;;  %p1092_p11 = scmp.ne.s32.totalorder %s1087_s10, 0 }
  0x3f   : > { %v362_v20 = vld [vmem:[%s1082_s5] sm:$0xf]  ;;  %p778_p6 = scmp.ne.s32.totalorder %s1035_s15, %s777_s17  ;;  %s849_s3 = smov [#allocation6]  }
  0x40   : > { %278 = vadd.xlane.f32.xlu0 %v277_v5  ;;  %v540_v37 = vsub.s32 0, %v539_v35  ;;  %s781_s22 = sshll.u32 %s849_s3, 4  ;;  %s782_s22 = int_to_ptr.vmem [resolvable:$false] %s781_s22 }
  0x41   : > { %p779_p12 = pnand %p778_p6, %p1092_p11  ;;  %s783_s19 = scalar_lea.vmem %s782_s22, 256 }
  0x42   : > { %p784_p7 = scmp.lt.s32.totalorder %s1035_s15, %s782_s22  ;;  %p785_p10 = scmp.lt.s32.totalorder %s783_s19, %s777_s17 }
  0x43   : > { %p780_p13 = pneg %p779_p12 }
  0x44   : > { %p786_p2 = por %p785_p10, %p784_p7 }
  0x46   : > { %p787_p4 = pnand %p786_p2, %p780_p13 }
  0xcd   : > { %v279_v7 = vpop.xlane.xlu0 %278 }
  0xce   : > { %v280_v8 = vmul.f32 0.00390625, %v279_v7 }
  0xd0   : > { %675 = vmatpush3.msk.msra.mxu0 %vm274_vm0, %v280_v8 }
  0xd1   : > { %677 = vmatmul.mubr.msk.f32.vlgmr.msra.gmra.mrb[0].mxu0 %vm283_vm2, %v281_v9  ;;  %658 = vmatprep.subr.msk.mxu0 %vm274_vm0, %v272_v2 }
  0xd2   : > { %659 = vmatpush1.msk.msra.mxu0 %vm274_vm0, %v1003_v1  ;;  %519 = vmatprep.mubr.f32.mxu0 %v846_v6 }
  0xd5   : > { %660 = vmatmul.mubr.msk.f32.vlgmr.msra.gmra.mrb[2].mxu0 %vm283_vm2, %v447_v10 }
 0x1a4   : > { %v356_v12 = vpop.f32.mrb[0].mxu0 }
 0x1a5   : > { %v357_v13 = vadd.f32 %v356_v12, %v282_v11  ;;  %v678_v14 = vpop.f32.mrb[1].mxu0 }
 0x1a7   : > { %v360_v15 = vmax.f32 %v357_v13, 0.0 }
 0x1a8   : > { %v521_v18 = vpop.f32.mrb[2].mxu0 }
 0x1a9   : > { %680 = vmatpush3.msk.msra.mxu1 %vm367_vm3, %v360_v15  ;;  %v523_v19 = vpop.f32.mrb[3].mxu0  ;;  %v661_v28 = vmul.f32 -1.442695, %v521_v18 }
 0x1aa   : > { %682 = vmatmul.mubr.msk.f32.vlgmr.msra.gmra.mrb[0].mxu1 %vm363_vm4, %v361_v16  ;;  %v662_v29 = vmul.f32 -1.442695, %v523_v19 }
 0x27d   : > { %v437_v21 = vpop.f32.mrb[0].mxu1 }
 0x27e   : > { %v438_v22 = vadd.f32 %v437_v21, %v362_v20  ;;  %v683_v23 = vpop.f32.mrb[1].mxu1 }
 0x280   : > { %v657_v24 = vmul.f32 -1.442695, %v438_v22 }
 0x282   : > { %735 = vpow2.f32 %v657_v24 }
 0x28c   : > { %v736_v25 = vpop.eup %735 }
 0x28d   : > { %v444_v26 = vadd.f32 1.0, %v736_v25 }
 0x28f   : > { %737 = vrcp.f32 %v444_v26 }
 0x290   : > { %739 = vpow2.f32 %v661_v28 }
 0x291   : > { %741 = vpow2.f32 %v662_v29 }
 0x299   : > { %v738_v27 = vpop.eup %737 }
 0x29a   : > { %548 = vperm.xlu0 %733, %v738_v27   ;;  %v740_v30 = vpop.eup %739 }
 0x29b   : > { %v742_v31 = vpop.eup %741  ;;  %v532_v32 = vadd.f32 1.0, %v740_v30 }
 0x29c   : > { %v533_v33 = vadd.f32 1.0, %v742_v31 }
 0x29d   : > { %743 = vrcp.f32 %v532_v32 }
 0x29e   : > { %745 = vrcp.f32 %v533_v33 }
 0x2a7   : > { %v744_v36 = vpop.eup %743 }
 0x2a8   : > { %v746_v38 = vpop.eup %745  ;;  %v541_v39 = vrot.slane %v744_v36, %v540_v37 }
 0x2a9   : > { %v545_v40 = vrot.slane %v746_v38, %v540_v37 }
 0x319   : > { %v549_v41 = vpop.permute.xlu0 %548 }
 0x31a   : > { %v551_v42 = vadd.f32 %v549_v41, %v541_v39  ;;  %v552_v43 = vadd.f32 %v549_v41, %v545_v40 }
 0x31c   : > { %v555_v44 = vcombine.low %v551_v42, %v552_v43 }
 0x31e   : > { %v557_v45 = vmul.f32 %v555_v44, %v1003_v1 }
 0x320   : > { %558 = vst [vmem:[%s269_s14] sm:$0xff] %v557_v45 }
 0x321   : > { %790 = shalt.err (!%p787_p4)
}
 0x322   : > { %s791_s18 = scalar_lea.hbm %s1033_s20, 128  ;;  %s795_s30 = scalar_lea.hbm %s1083_s6, 256 }
 0x323   : > { %p792_p5 = scmp.ne.s32.totalorder %s1033_s20, %s791_s18  ;;  %p796_p0 = scmp.lt.u32.totalorder %s1033_s20, %s1083_s6 }
 0x324   : > { %p797_p1 = scmp.lt.u32.totalorder %s795_s30, %s791_s18  ;;  %p799_p6 = scmp.lt.u32.totalorder %s791_s18, %s1033_s20 }
 0x325   : > { %p793_p8 = pnand %p792_p5, %p1092_p11 }
 0x326   : > { %p798_p3 = por %p797_p1, %p796_p0 }
 0x327   : > { %p794_p9 = pneg %p793_p8 }
 0x328   : > { %p800_p12 = por %p799_p6, %p798_p3 }
 0x32a   : > { %p801_p13 = pnand %p800_p12, %p794_p9 }
 0x32c   : > { %804 = shalt.err (!%p801_p13)
}
 0x32d   : > { %686 = dma.vmem_to_hbm [thread:$0]  (%p1092_p11), %s1035_s15, 128, %s1033_s20, %s560_s9  }
 0x32e PF: > { %s586_s12 = sand.u32 1, %s831_s23   ;;  %p1093_p7 = scmp.ne.s32.totalorder %s1088_s11, 0 }
 0x32f   : > { %p1094_p10 = scmp.ge.s32.totalorder %s843_s26, 2  ;;  %s587_s14 = scalar_lea.sflag [#allocation5], %s586_s12 }
 0x331   : > { %p693_p2 = pnand %p1094_p10, %p1093_p7 }
 0x333   : > { %826 = dma.done.wait (!%p693_p2), %s587_s14, 128  }
 0x334   : > { %828 = vsyncadd (!%p693_p2), %s587_s14, 4294967168  ;;  %p21_p4 = scmp.ge.s32.totalorder %s913_s28, 4   ;;  %s1095_s23 = smov %s835_s24 }
 0x335   : > { %s1096_s24 = smov %s839_s25  ;;  %s1097_s25 = smov %s925_s7 }
 0x336   : > { %s1098_s26 = smov %s913_s28  ;;  %23 = sbr.rel (!%p21_p4) target bundleno = 8 (0x8), region = 89 }
 0x33d   :  { %592 = vsyncpa [#allocation4], 1 }
 0x33e   :  { %594 = vsyncpa [#allocation4 + $0x1], 1 }
 0x33f   :  { %595 = vsyncpa [#allocation5], 1 }
 0x340   :  { %597 = vsyncpa [#allocation5 + $0x1], 1 }

</bundles_post_ra>
